<compile_context>
chip_gen: v7x
topology: tpu7x:2x2x1
jax: 0.10.0
libtpu: 0.0.40
codegen_flags: <defaults>
</compile_context>

<pallas_src>
import functools

import jax
import jax.numpy as jnp
from jax.experimental import pallas as pl
from jax.experimental.pallas import tpu as pltpu

HIDDEN = 32   # "hidden" in the module (default 64; small shape for the demo)
SIZE = 3      # conv kernel size ("size" arg); 3 keeps the residual shapes matching
DIL = 2       # dilation ("dil" arg)
PAD = DIL     # padding = dil (as in the module)
EPS = 1e-5
ALIGN = 128   # lane alignment for batch-slab strides


# ------------------------------- Pallas kernel -------------------------------------

def resblock_kernel(x_ref, w_ref, p_ref, o_ref, pad_sc, *, N, L, S):
    # x_ref  : (C, WS)          bf16  padded, batch-folded activation; slab stride S (128-aligned)
    #                                 slab n = [PAD zeros | L data | zeros ...], WS = N*S + 128
    # w_ref  : (2, C, SIZE*C)   bf16  fused-tap conv weights [conv1, conv2]
    # p_ref  : (C, 4)           f32   packed per-channel BN params [g1, be1, g2, be2]
    # o_ref  : (C, N*S)         bf16  lane-dense folded output (valid where (j % S) < L)
    # pad_sc : (C, WS)          bf16  VMEM scratch: re-padded hidden activation for conv2
    C, WS = x_ref.shape
    Ntot = N * S
    inv_count = 1.0 / float(N * L)

    # 0/1 mask over the folded lane axis: 1 at the N*L valid conv-output positions.
    j = jax.lax.broadcasted_iota(jnp.int32, (1, Ntot), 1)
    mask = ((j % S) < L).astype(jnp.float32)                 # (1, Ntot)

    def taps(src):
        # SIZE lane-shifted bf16 views stacked along the contraction (sublane) axis
        return jnp.concatenate(
            [src[:, k * DIL: k * DIL + Ntot] for k in range(SIZE)], axis=0
        )                                                    # (SIZE*C, Ntot) bf16

    def conv_bn(src, widx, pcol):
        gamma = p_ref[:, pcol + 0: pcol + 1]                 # (C, 1)
        beta = p_ref[:, pcol + 1: pcol + 2]
        # one fused (C, 3C) @ (3C, Ntot) bf16 MXU matmul, f32 accumulation.
        # (conv bias omitted: it is exactly cancelled by the BN mean subtraction.)
        y = jnp.dot(w_ref[widx], taps(src), preferred_element_type=jnp.float32)
        # single-pass training-mode BN statistics over valid (N, L) positions, f32
        ym = y * mask
        s = jnp.sum(ym, axis=1, keepdims=True)               # (C, 1)
        ss = jnp.sum(ym * ym, axis=1, keepdims=True)         # (C, 1)
        mean = s * inv_count
        var = jnp.maximum(ss * inv_count - mean * mean, 0.0)
        return (y - mean) * jax.lax.rsqrt(var + EPS) * gamma + beta

    # conv1 -> bn1 -> relu (mask forces halo / alignment lanes back to exact zeros)
    h = jnp.maximum(conv_bn(x_ref, 0, 0), 0.0) * mask        # (C, Ntot) f32

    # re-pad for conv2: zero only the halo/tail lane columns (aligned 128-wide stores),
    # then one lane-offset store of h -- its masked zeros land exactly on the pads.
    pad_sc[:, :ALIGN] = jnp.zeros((C, ALIGN), pad_sc.dtype)
    pad_sc[:, Ntot:] = jnp.zeros((C, WS - Ntot), pad_sc.dtype)
    pad_sc[:, PAD: PAD + Ntot] = h.astype(pad_sc.dtype)

    # conv2 -> bn2, residual add (identity is ONE lane-shifted view of x), final relu.
    # Lanes with (j % S) >= L carry don't-care values; the wrapper discards them.
    y2 = conv_bn(pad_sc, 1, 2)                               # (C, Ntot) f32
    identity = x_ref[:, PAD: PAD + Ntot].astype(jnp.float32)
    o_ref[...] = jnp.maximum(y2 + identity, 0.0).astype(o_ref.dtype)


@jax.jit
def resblock_forward(x, wcat, pvec):
    N, C, L = x.shape
    S = ((L + 2 * PAD + ALIGN - 1) // ALIGN) * ALIGN         # 128-aligned batch-slab stride
    Ntot = N * S
    WS = Ntot + ALIGN                                        # tail covers the (SIZE-1)*DIL tap halo
    assert (SIZE - 1) * DIL <= ALIGN and S >= L + 2 * PAD

    # Fold the batch into the lane axis and pad each slab -- plain JAX, outside the kernel,
    # so the kernel's HBM I/O is lane-dense and 128-aligned.
    x_slab = jnp.pad(jnp.transpose(x, (1, 0, 2)),
                     ((0, 0), (0, 0), (PAD, S - L - PAD))).reshape(C, Ntot)
    x_folded = jnp.pad(x_slab, ((0, 0), (0, WS - Ntot)))     # (C, WS) bf16

    vmem = pl.BlockSpec(memory_space=pltpu.MemorySpace.VMEM)
    out_slab = pl.pallas_call(
        functools.partial(resblock_kernel, N=N, L=L, S=S),
        out_shape=jax.ShapeDtypeStruct((C, Ntot), x.dtype),
        in_specs=[vmem, vmem, vmem],
        out_specs=vmem,
        scratch_shapes=[pltpu.VMEM((C, WS), jnp.bfloat16)],
        # generation-safe scoped limit; re-derive per chip when the L-tiled grid is added
        compiler_params=pltpu.CompilerParams(vmem_limit_bytes=32 * 1024 * 1024),
    )(x_folded, wcat, pvec)

    # unfold: (C, N*S) -> (N, C, L) in plain JAX
    return jnp.transpose(out_slab.reshape(C, N, S)[:, :, :L], (1, 0, 2))


# ------------------------------ host-side packing -----------------------------------

def pack_params(p):
    # fuse the SIZE taps along the contraction axis: (C, SIZE*C) per conv, stacked; bf16 MXU operands
    wcat = jnp.stack([
        jnp.concatenate([p["w1"][k] for k in range(SIZE)], axis=1),
        jnp.concatenate([p["w2"][k] for k in range(SIZE)], axis=1),
    ]).astype(jnp.bfloat16)                                  # (2, C, SIZE*C)
    # conv biases b1/b2 are cancelled by the BN mean subtraction -> not passed to the kernel
    pvec = jnp.concatenate(
        [p["g1"], p["be1"], p["g2"], p["be2"]], axis=1
    ).astype(jnp.float32)                                    # (C, 4)
    return wcat, pvec


# ------------------------- pure-JAX reference (for checking) ------------------------

def ref_forward(x, p):
    def conv(h, w, b):
        w_oik = jnp.transpose(w, (1, 2, 0))                  # (O, I, K)
        y = jax.lax.conv_general_dilated(
            h, w_oik, window_strides=(1,), padding=[(PAD, PAD)],
            rhs_dilation=(DIL,), dimension_numbers=("NCH", "OIH", "NCH"))
        return y + b[None, :, :]

    def bn(h, g, be):
        mean = h.mean(axis=(0, 2), keepdims=True)
        var = ((h - mean) ** 2).mean(axis=(0, 2), keepdims=True)
        return (h - mean) / jnp.sqrt(var + EPS) * g[None, :, :] + be[None, :, :]

    h = jax.nn.relu(bn(conv(x, p["w1"], p["b1"]), p["g1"], p["be1"]))
    h2 = bn(conv(h, p["w2"], p["b2"]), p["g2"], p["be2"])
    return jax.nn.relu(h2 + x)


# ------------------------------------ main ------------------------------------------

def init_params(key, C):
    ks = jax.random.split(key, 8)
    bound = 1.0 / jnp.sqrt(C * SIZE)                         # Conv1d init bound
    u = lambda k, shp: jax.random.uniform(k, shp, jnp.float32, -bound, bound)
    return {
        "w1": u(ks[0], (SIZE, C, C)),
        "b1": u(ks[1], (C, 1)),
        "g1": 1.0 + 0.1 * jax.random.normal(ks[2], (C, 1), jnp.float32),
        "be1": 0.1 * jax.random.normal(ks[3], (C, 1), jnp.float32),
        "w2": u(ks[4], (SIZE, C, C)),
        "b2": u(ks[5], (C, 1)),
        "g2": 1.0 + 0.1 * jax.random.normal(ks[6], (C, 1), jnp.float32),
        "be2": 0.1 * jax.random.normal(ks[7], (C, 1), jnp.float32),
    }


if __name__ == "__main__":
    key = jax.random.PRNGKey(0)
    kx, kp = jax.random.split(key)

    N, C, L = 2, HIDDEN, 16                                  # batch=2, hidden=32, seq=16
    # activations live in bf16 (HBM I/O); BN math and matmul accumulation stay f32
    x = jax.random.normal(kx, (N, C, L), jnp.float32).astype(jnp.bfloat16)
    params = init_params(kp, C)
    wcat, pvec = pack_params(params)

    out = jax.block_until_ready(resblock_forward(x, wcat, pvec))
    ref = jax.block_until_ready(ref_forward(x.astype(jnp.float32), params))

    assert out.shape == (N, C, L) and out.dtype == jnp.bfloat16
    out_f32 = out.astype(jnp.float32)
    max_err = float(jnp.max(jnp.abs(out_f32 - ref)))
    # bf16 MXU operands (weights + repad scratch) vs. the f32 reference -> looser tolerance
    assert jnp.allclose(out_f32, ref, atol=5e-2, rtol=5e-2), f"mismatch vs reference: {max_err}"

    print("KERNEL_OK")
</pallas_src>

<mosaic_0001>
module attributes {stable_mosaic.version = 11 : i64} {
  func.func @resblock_kernel(%arg0: memref<32x384xbf16, #tpu.memory_space<vmem>>, %arg1: memref<2x32x96xbf16, #tpu.memory_space<vmem>>, %arg2: memref<32x4xf32, #tpu.memory_space<vmem>>, %arg3: memref<32x256xbf16, #tpu.memory_space<vmem>>, %arg4: memref<32x384xbf16, #tpu.memory_space<vmem>>) attributes {dimension_semantics = [], scalar_prefetch = 0 : i64, scratch_operands = 1 : i64, tpu.core_type = #tpu.core_type<tc>} {
    %0 = tpu.iota {dimensions = array<i32: 1>} : vector<1x256xi32>
    %c128_i32 = arith.constant 128 : i32
    %c0_i32 = arith.constant 0 : i32
    %1 = arith.cmpi eq, %c128_i32, %c0_i32 : i32
    %c1_i32 = arith.constant 1 : i32
    %2 = arith.select %1, %c1_i32, %c128_i32 : i32
    %3 = vector.broadcast %2 : i32 to vector<1x256xi32>
    %4 = arith.remsi %0, %3 : vector<1x256xi32>
    %c0_i32_0 = arith.constant 0 : i32
    %5 = vector.broadcast %c0_i32_0 : i32 to vector<1x256xi32>
    %6 = arith.cmpi ne, %4, %5 : vector<1x256xi32>
    %c0_i32_1 = arith.constant 0 : i32
    %7 = vector.broadcast %c0_i32_1 : i32 to vector<1x256xi32>
    %8 = arith.cmpi slt, %4, %7 : vector<1x256xi32>
    %c0_i32_2 = arith.constant 0 : i32
    %9 = arith.cmpi slt, %2, %c0_i32_2 : i32
    %10 = vector.broadcast %9 : i1 to vector<1x256xi1>
    %11 = vector.broadcast %10 : vector<1x256xi1> to vector<1x256xi1>
    %12 = arith.xori %8, %11 : vector<1x256xi1>
    %13 = arith.andi %12, %6 : vector<1x256xi1>
    %14 = vector.broadcast %2 : i32 to vector<1x256xi32>
    %15 = arith.addi %4, %14 : vector<1x256xi32>
    %16 = arith.select %13, %15, %4 : vector<1x256xi1>, vector<1x256xi32>
    %c16_i32 = arith.constant 16 : i32
    %17 = vector.broadcast %c16_i32 : i32 to vector<1x256xi32>
    %18 = arith.cmpi slt, %16, %17 : vector<1x256xi32>
    %19 = arith.extui %18 : vector<1x256xi1> to vector<1x256xi32>
    %20 = arith.sitofp %19 : vector<1x256xi32> to vector<1x256xf32>
    %c0 = arith.constant 0 : index
    %c0_3 = arith.constant 0 : index
    %21 = vector.load %arg2[%c0, %c0_3] : memref<32x4xf32, #tpu.memory_space<vmem>>, vector<32x1xf32>
    %c0_4 = arith.constant 0 : index
    %c1 = arith.constant 1 : index
    %22 = vector.load %arg2[%c0_4, %c1] : memref<32x4xf32, #tpu.memory_space<vmem>>, vector<32x1xf32>
    %c0_5 = arith.constant 0 : index
    %c0_6 = arith.constant 0 : index
    %c0_7 = arith.constant 0 : index
    %23 = vector.load %arg1[%c0_5, %c0_6, %c0_7] : memref<2x32x96xbf16, #tpu.memory_space<vmem>>, vector<1x32x96xbf16>
    %24 = vector.shape_cast %23 : vector<1x32x96xbf16> to vector<32x96xbf16>
    %c0_8 = arith.constant 0 : index
    %c0_9 = arith.constant 0 : index
    %25 = vector.load %arg0[%c0_8, %c0_9] : memref<32x384xbf16, #tpu.memory_space<vmem>>, vector<32x256xbf16>
    %c0_10 = arith.constant 0 : index
    %c2 = arith.constant 2 : index
    %26 = vector.load %arg0[%c0_10, %c2] : memref<32x384xbf16, #tpu.memory_space<vmem>>, vector<32x256xbf16>
    %c0_11 = arith.constant 0 : index
    %c4 = arith.constant 4 : index
    %27 = vector.load %arg0[%c0_11, %c4] : memref<32x384xbf16, #tpu.memory_space<vmem>>, vector<32x256xbf16>
    %28 = tpu.concatenate %25, %26, %27 in 0 : vector<32x256xbf16>, vector<32x256xbf16>, vector<32x256xbf16> -> vector<96x256xbf16>
    %cst = arith.constant dense<0.000000e+00> : vector<32x256xf32>
    %29 = tpu.matmul %24, %28, %cst {dimension_numbers = #tpu.dot_dimension_numbers<[1], [0], [0], [1], [0, 0, 1, 1], [], []>} : vector<32x96xbf16>, vector<96x256xbf16>, vector<32x256xf32> -> vector<32x256xf32>
    %30 = vector.broadcast %20 : vector<1x256xf32> to vector<32x256xf32>
    %31 = arith.mulf %29, %30 : vector<32x256xf32>
    %cst_12 = arith.constant dense<0.000000e+00> : vector<32xf32>
    %32 = vector.multi_reduction <add>, %31, %cst_12 [1] : vector<32x256xf32> to vector<32xf32>
    %33 = vector.shape_cast %32 : vector<32xf32> to vector<32x1xf32>
    %34 = arith.mulf %31, %31 : vector<32x256xf32>
    %cst_13 = arith.constant dense<0.000000e+00> : vector<32xf32>
    %35 = vector.multi_reduction <add>, %34, %cst_13 [1] : vector<32x256xf32> to vector<32xf32>
    %36 = vector.shape_cast %35 : vector<32xf32> to vector<32x1xf32>
    %cst_14 = arith.constant 3.125000e-02 : f32
    %37 = vector.broadcast %cst_14 : f32 to vector<32x1xf32>
    %38 = arith.mulf %33, %37 : vector<32x1xf32>
    %cst_15 = arith.constant 3.125000e-02 : f32
    %39 = vector.broadcast %cst_15 : f32 to vector<32x1xf32>
    %40 = arith.mulf %36, %39 : vector<32x1xf32>
    %41 = arith.mulf %38, %38 : vector<32x1xf32>
    %42 = arith.subf %40, %41 : vector<32x1xf32>
    %cst_16 = arith.constant 0.000000e+00 : f32
    %43 = vector.broadcast %cst_16 : f32 to vector<32x1xf32>
    %44 = arith.maximumf %42, %43 : vector<32x1xf32>
    %45 = vector.broadcast %38 : vector<32x1xf32> to vector<32x256xf32>
    %46 = arith.subf %29, %45 : vector<32x256xf32>
    %cst_17 = arith.constant 9.99999974E-6 : f32
    %47 = vector.broadcast %cst_17 : f32 to vector<32x1xf32>
    %48 = arith.addf %44, %47 : vector<32x1xf32>
    %49 = math.rsqrt %48 : vector<32x1xf32>
    %50 = vector.broadcast %49 : vector<32x1xf32> to vector<32x256xf32>
    %51 = arith.mulf %46, %50 : vector<32x256xf32>
    %52 = vector.broadcast %21 : vector<32x1xf32> to vector<32x256xf32>
    %53 = arith.mulf %51, %52 : vector<32x256xf32>
    %54 = vector.broadcast %22 : vector<32x1xf32> to vector<32x256xf32>
    %55 = arith.addf %53, %54 : vector<32x256xf32>
    %cst_18 = arith.constant 0.000000e+00 : f32
    %56 = vector.broadcast %cst_18 : f32 to vector<32x256xf32>
    %57 = arith.maximumf %55, %56 : vector<32x256xf32>
    %58 = vector.broadcast %20 : vector<1x256xf32> to vector<32x256xf32>
    %59 = arith.mulf %57, %58 : vector<32x256xf32>
    %cst_19 = arith.constant 0.000000e+00 : bf16
    %60 = vector.broadcast %cst_19 : bf16 to vector<32x128xbf16>
    %c0_20 = arith.constant 0 : index
    %c0_21 = arith.constant 0 : index
    %61 = vector.load %arg4[%c0_20, %c0_21] : memref<32x384xbf16, #tpu.memory_space<vmem>>, vector<32x128xbf16>
    tpu.vector_store %arg4[%c0_20, %c0_21], %60 {strides = array<i32>} : memref<32x384xbf16, #tpu.memory_space<vmem>>, vector<32x128xbf16>,
    %cst_22 = arith.constant 0.000000e+00 : bf16
    %62 = vector.broadcast %cst_22 : bf16 to vector<32x128xbf16>
    %c0_23 = arith.constant 0 : index
    %c256 = arith.constant 256 : index
    %63 = vector.load %arg4[%c0_23, %c256] : memref<32x384xbf16, #tpu.memory_space<vmem>>, vector<32x128xbf16>
    tpu.vector_store %arg4[%c0_23, %c256], %62 {strides = array<i32>} : memref<32x384xbf16, #tpu.memory_space<vmem>>, vector<32x128xbf16>,
    %64 = arith.truncf %59 : vector<32x256xf32> to vector<32x256xbf16>
    %c0_24 = arith.constant 0 : index
    %c2_25 = arith.constant 2 : index
    %65 = vector.load %arg4[%c0_24, %c2_25] : memref<32x384xbf16, #tpu.memory_space<vmem>>, vector<32x256xbf16>
    tpu.vector_store %arg4[%c0_24, %c2_25], %64 {strides = array<i32>} : memref<32x384xbf16, #tpu.memory_space<vmem>>, vector<32x256xbf16>,
    %c0_26 = arith.constant 0 : index
    %c2_27 = arith.constant 2 : index
    %66 = vector.load %arg2[%c0_26, %c2_27] : memref<32x4xf32, #tpu.memory_space<vmem>>, vector<32x1xf32>
    %c0_28 = arith.constant 0 : index
    %c3 = arith.constant 3 : index
    %67 = vector.load %arg2[%c0_28, %c3] : memref<32x4xf32, #tpu.memory_space<vmem>>, vector<32x1xf32>
    %c1_29 = arith.constant 1 : index
    %c0_30 = arith.constant 0 : index
    %c0_31 = arith.constant 0 : index
    %68 = vector.load %arg1[%c1_29, %c0_30, %c0_31] : memref<2x32x96xbf16, #tpu.memory_space<vmem>>, vector<1x32x96xbf16>
    %69 = vector.shape_cast %68 : vector<1x32x96xbf16> to vector<32x96xbf16>
    %c0_32 = arith.constant 0 : index
    %c0_33 = arith.constant 0 : index
    %70 = vector.load %arg4[%c0_32, %c0_33] : memref<32x384xbf16, #tpu.memory_space<vmem>>, vector<32x256xbf16>
    %c0_34 = arith.constant 0 : index
    %c2_35 = arith.constant 2 : index
    %71 = vector.load %arg4[%c0_34, %c2_35] : memref<32x384xbf16, #tpu.memory_space<vmem>>, vector<32x256xbf16>
    %c0_36 = arith.constant 0 : index
    %c4_37 = arith.constant 4 : index
    %72 = vector.load %arg4[%c0_36, %c4_37] : memref<32x384xbf16, #tpu.memory_space<vmem>>, vector<32x256xbf16>
    %73 = tpu.concatenate %70, %71, %72 in 0 : vector<32x256xbf16>, vector<32x256xbf16>, vector<32x256xbf16> -> vector<96x256xbf16>
    %cst_38 = arith.constant dense<0.000000e+00> : vector<32x256xf32>
    %74 = tpu.matmul %69, %73, %cst_38 {dimension_numbers = #tpu.dot_dimension_numbers<[1], [0], [0], [1], [0, 0, 1, 1], [], []>} : vector<32x96xbf16>, vector<96x256xbf16>, vector<32x256xf32> -> vector<32x256xf32>
    %75 = vector.broadcast %20 : vector<1x256xf32> to vector<32x256xf32>
    %76 = arith.mulf %74, %75 : vector<32x256xf32>
    %cst_39 = arith.constant dense<0.000000e+00> : vector<32xf32>
    %77 = vector.multi_reduction <add>, %76, %cst_39 [1] : vector<32x256xf32> to vector<32xf32>
    %78 = vector.shape_cast %77 : vector<32xf32> to vector<32x1xf32>
    %79 = arith.mulf %76, %76 : vector<32x256xf32>
    %cst_40 = arith.constant dense<0.000000e+00> : vector<32xf32>
    %80 = vector.multi_reduction <add>, %79, %cst_40 [1] : vector<32x256xf32> to vector<32xf32>
    %81 = vector.shape_cast %80 : vector<32xf32> to vector<32x1xf32>
    %cst_41 = arith.constant 3.125000e-02 : f32
    %82 = vector.broadcast %cst_41 : f32 to vector<32x1xf32>
    %83 = arith.mulf %78, %82 : vector<32x1xf32>
    %cst_42 = arith.constant 3.125000e-02 : f32
    %84 = vector.broadcast %cst_42 : f32 to vector<32x1xf32>
    %85 = arith.mulf %81, %84 : vector<32x1xf32>
    %86 = arith.mulf %83, %83 : vector<32x1xf32>
    %87 = arith.subf %85, %86 : vector<32x1xf32>
    %cst_43 = arith.constant 0.000000e+00 : f32
    %88 = vector.broadcast %cst_43 : f32 to vector<32x1xf32>
    %89 = arith.maximumf %87, %88 : vector<32x1xf32>
    %90 = vector.broadcast %83 : vector<32x1xf32> to vector<32x256xf32>
    %91 = arith.subf %74, %90 : vector<32x256xf32>
    %cst_44 = arith.constant 9.99999974E-6 : f32
    %92 = vector.broadcast %cst_44 : f32 to vector<32x1xf32>
    %93 = arith.addf %89, %92 : vector<32x1xf32>
    %94 = math.rsqrt %93 : vector<32x1xf32>
    %95 = vector.broadcast %94 : vector<32x1xf32> to vector<32x256xf32>
    %96 = arith.mulf %91, %95 : vector<32x256xf32>
    %97 = vector.broadcast %66 : vector<32x1xf32> to vector<32x256xf32>
    %98 = arith.mulf %96, %97 : vector<32x256xf32>
    %99 = vector.broadcast %67 : vector<32x1xf32> to vector<32x256xf32>
    %100 = arith.addf %98, %99 : vector<32x256xf32>
    %c0_45 = arith.constant 0 : index
    %c2_46 = arith.constant 2 : index
    %101 = vector.load %arg0[%c0_45, %c2_46] : memref<32x384xbf16, #tpu.memory_space<vmem>>, vector<32x256xbf16>
    %102 = arith.extf %101 : vector<32x256xbf16> to vector<32x256xf32>
    %103 = arith.addf %100, %102 : vector<32x256xf32>
    %cst_47 = arith.constant 0.000000e+00 : f32
    %104 = vector.broadcast %cst_47 : f32 to vector<32x256xf32>
    %105 = arith.maximumf %103, %104 : vector<32x256xf32>
    %106 = arith.truncf %105 : vector<32x256xf32> to vector<32x256xbf16>
    %c0_48 = arith.constant 0 : index
    %c0_49 = arith.constant 0 : index
    %107 = vector.load %arg3[%c0_48, %c0_49] : memref<32x256xbf16, #tpu.memory_space<vmem>>, vector<32x256xbf16>
    tpu.vector_store %arg3[%c0_48, %c0_49], %106 {strides = array<i32>} : memref<32x256xbf16, #tpu.memory_space<vmem>>, vector<32x256xbf16>,
    return
  }
}

</mosaic_0001>

<bundles_post_ra>
// kernel: resblock_forward.1
= control target key start
LH: loop header
LB: loop body
LE: loop exit
PB: predicated region body
PF: predicated region fallthrough
CT: control target
= control target key end

     0   :  { %s911_s20 = smov 126   ;;  %v912_v10 = vmov 0   ;;  %s913_s25 = smov 124   ;;  %vm126_vm0 = vcmask 1031168   ;;  %vm147_vm1 = vcmask 1014784   ;;  %vm166_vm2 = vcmask 785408   ;;  %s1252_s0 = inlined_call_operand.vmem [shape: bf16[32,384], index: 0, kind: input, shape index: {}]   ;;  %s1253_s1 = inlined_call_operand.vmem [shape: bf16[2,32,96], index: 1, kind: input, shape index: {}]   ;;  %s1254_s2 = inlined_call_operand.vmem [shape: f32[32,4], index: 2, kind: input, shape index: {}]   ;;  %s1255_s3 = inlined_call_operand.vmem [shape: bf16[32,256], index: 3, kind: output, shape index: {}]  }
   0x1   :  { %v942_v0 = vld [vmem:[%s1252_s0] sm:$0xff]  ;;  %v947_v1 = vld [vmem:[%s1252_s0 + $0xc] sm:$0xff]  ;;  %v956_v4 = vld [vmem:[%s1252_s0 + $0x18] sm:$0xff]  ;;  %205 = vmatprep.mubr.bf16.mxu0 %v912_v10  ;;  %378 = vst [vmem:[#allocation2] sm:$0xff] %v912_v10  ;;  %846 = vset.pattern.permute.xlu1 %v912_v10  ;;  %v914_v34 = vmov 1   ;;  %v15_v35 = vlaneseq  ;;  %v915_v39 = vmov 0.0  }
   0x2   :  { %v813_v2 = vcombine.high %v942_v0, %v947_v1  ;;  %v812_v3 = vcombine.low %v942_v0, %v947_v1  ;;  %v961_v5 = vld [vmem:[%s1252_s0 + $0x24] sm:$0xff]  ;;  %v889_v8 = vld [vmem:[%s1252_s0 + $0x20] ss:$12 sps:$4 sm:$0xff]   ;;  %379 = vst [vmem:[#allocation2 + $0x18] sm:$0xff] %v912_v10  ;;  %380 = vst [vmem:[#allocation2 + $0x10] sm:$0xff] %v912_v10  ;;  %847 = vset.pattern.permute.xlu0 %v912_v10  ;;  %528 = vmatprep.mubr.bf16.mxu1 %v912_v10  ;;  %vm407_vm5 = vcmask 1047568  }
   0x3   :  { %v887_v6 = vld [vmem:[%s1252_s0 + $0x8] ss:$12 sps:$4 sm:$0xff]   ;;  %v816_v7 = vcombine.high %v956_v4, %v961_v5  ;;  %v815_v9 = vcombine.low %v956_v4, %v961_v5  ;;  %381 = vst [vmem:[#allocation2 + $0x28] sm:$0xff] %v912_v10  ;;  %v996_v11 = vld [vmem:[%s1254_s2] sm:$0xff]  ;;  %v16_v36 = vand.u32 127, %v15_v35  ;;  %vm398_vm6 = vcmask 15360  }
   0x4   :  { %116 = vrot.lane.b32.xlu0 %v813_v2, %s911_s20  ;;  %114 = vrot.lane.b32.xlu1 %v812_v3, %s911_s20  ;;  %v891_v32 = vld [vmem:[%s1253_s1] sm:$0xff]   ;;  %v892_v33 = vld [vmem:[%s1253_s1 + $0x8] sm:$0xff]  }
   0x5   :  { %173 = vmatprep.subr.bf16.mxu0 %v813_v2  ;;  %v17_v37 = vadd.s32 128, %v16_v36  ;;  %vm42_vm3 = vcmp.lt.s32.totalorder %v16_v36, 16 }
   0x6   :  { %174 = vmatpush1.bf16.msra.mxu0 %v812_v3  ;;  %v1016_v40 = vsel %vm42_vm3, 1.0, %v915_v39 }
   0x7   :  { %175 = vmatprep.subr.bf16.mxu0 %v816_v7  ;;  %v29_v38 = vand.u32 127, %v17_v37 }
   0x8   :  { %118 = vrot.lane.b32.xlu0 %v887_v6, %s911_s20  ;;  %122 = vrot.lane.b32.xlu1 %v816_v7, %s911_s20 }
   0x9   :  { %vm43_vm4 = vcmp.lt.s32.totalorder %v29_v38, 16 }
   0xa   :  { %176 = vmatpush1.bf16.msra.mxu0 %v815_v9  ;;  %v1018_v41 = vsel %vm43_vm4, 1.0, %v915_v39 }
   0xc   :  { %124 = vrot.lane.b32.xlu0 %v889_v8, %s911_s20  ;;  %120 = vrot.lane.b32.xlu1 %v815_v9, %s911_s20 }
  0x10   :  { %137 = vrot.lane.b32.xlu0 %v813_v2, %s913_s25  ;;  %139 = vrot.lane.b32.xlu1 %v887_v6, %s913_s25 }
  0x14   :  { %135 = vrot.lane.b32.xlu0 %v812_v3, %s913_s25  ;;  %143 = vrot.lane.b32.xlu1 %v816_v7, %s913_s25 }
  0x18   :  { %145 = vrot.lane.b32.xlu0 %v889_v8, %s913_s25  ;;  %141 = vrot.lane.b32.xlu1 %v815_v9, %s913_s25 }
  0x1c   :  { %312 = vperm.xlu1 %846, %v996_v11  }
  0x20   :  { %848 = vset.pattern.permute.xlu1 %v914_v34 }
  0x76   :  { %v117_v12 = vpop.permute.xlu0 %116  ;;  %v115_v13 = vpop.permute.xlu1 %114 }
  0x77   :  { %v127_v17 = vsel %vm126_vm0, %v115_v13, %v117_v12 }
  0x7a   :  { %v119_v14 = vpop.permute.xlu0 %118  ;;  %v123_v15 = vpop.permute.xlu1 %122 }
  0x7b   :  { %v128_v16 = vsel %vm126_vm0, %v117_v12, %v119_v14 }
  0x7c   :  { %177 = vmatprep.subr.bf16.mxu0 %v128_v16  ;;  %v1056_v16 = vld [vmem:[%s1254_s2 + $0x8] sm:$0xff] }
  0x7d   :  { %178 = vmatpush1.bf16.msra.mxu0 %v127_v17  ;;  %v1062_v17 = vld [vmem:[%s1254_s2 + $0x10] sm:$0xff] }
  0x7e   :  { %v125_v18 = vpop.permute.xlu0 %124  ;;  %v121_v19 = vpop.permute.xlu1 %120 }
  0x7f   :  { %v130_v20 = vsel %vm126_vm0, %v123_v15, %v125_v18  ;;  %v129_v21 = vsel %vm126_vm0, %v121_v19, %v123_v15  ;;  %v1070_v18 = vld [vmem:[%s1254_s2 + $0x18] sm:$0xff]  ;;  %s916_s2 = smov 2  }
  0x80   :  { %179 = vmatprep.subr.bf16.mxu0 %v130_v20 }
  0x81   :  { %180 = vmatpush1.bf16.msra.mxu0 %v129_v21 }
  0x82   :  { %v138_v22 = vpop.permute.xlu0 %137  ;;  %v140_v23 = vpop.permute.xlu1 %139 }
  0x83   :  { %v149_v24 = vsel %vm147_vm1, %v138_v22, %v140_v23 }
  0x84   :  { %181 = vmatprep.subr.bf16.mxu0 %v149_v24 }
  0x86   :  { %v136_v25 = vpop.permute.xlu0 %135  ;;  %v144_v26 = vpop.permute.xlu1 %143 }
  0x87   :  { %v148_v27 = vsel %vm147_vm1, %v136_v25, %v138_v22 }
  0x88   :  { %182 = vmatpush1.bf16.msra.mxu0 %v148_v27 }
  0x8a   :  { %v146_v28 = vpop.permute.xlu0 %145  ;;  %v142_v29 = vpop.permute.xlu1 %141 }
  0x8b   :  { %v151_v30 = vsel %vm147_vm1, %v144_v26, %v146_v28  ;;  %v150_v31 = vsel %vm147_vm1, %v142_v29, %v144_v26 }
  0x8c   :  { %183 = vmatprep.subr.bf16.mxu0 %v151_v30 }
  0x8d   :  { %184 = vmatpush1.bf16.msra.mxu0 %v150_v31 }
  0x90   :  { %820 = vmatmul.mubr.msk.bf16.vlgmr.msra.gmra.mrb[0].mxu0 %vm166_vm2, %v891_v32 }
  0x91   :  { %215 = vmatprep.mubr.bf16.mxu0 %v912_v10 }
  0x98   :  { %821 = vmatmul.mubr.msk.bf16.gmra.mrb[4].mxu0 %vm166_vm2, %v892_v33 }
  0x9b   :  { %v313_v19 = vpop.permute.xlu1 %312 }
 0x163   :  { %v1020_v42 = vpop.f32.mrb[0].mxu0 }
 0x164   :  { %v226_v43 = vmul.f32 %v1016_v40, %v1020_v42  ;;  %v1024_v44 = vpop.f32.mrb[1].mxu0 }
 0x165   :  { %v227_v45 = vmul.f32 %v1018_v41, %v1024_v44  ;;  %v1028_v46 = vpop.f32.mrb[2].mxu0 }
 0x166   :  { %v228_v47 = vmul.f32 %v1016_v40, %v1028_v46  ;;  %v1032_v48 = vpop.f32.mrb[3].mxu0  ;;  %v246_v49 = vmul.f32 %v226_v43, %v226_v43 }
 0x167   :  { %v229_v50 = vmul.f32 %v1018_v41, %v1032_v48  ;;  %v234_v51 = vadd.f32 %v227_v45, %v226_v43  ;;  %v247_v52 = vmul.f32 %v227_v45, %v227_v45 }
 0x168   :  { %v248_v53 = vmul.f32 %v228_v47, %v228_v47 }
 0x169   :  { %235 = vadd.xlane.f32.xlu0 %v234_v51  ;;  %v237_v54 = vadd.f32 %v229_v50, %v228_v47  ;;  %v254_v55 = vadd.f32 %v247_v52, %v246_v49  ;;  %v249_v56 = vmul.f32 %v229_v50, %v229_v50 }
 0x16b   :  { %238 = vadd.xlane.f32.xlu1 %v237_v54  ;;  %v1036_v57 = vpop.f32.mrb[4].mxu0  ;;  %v257_v58 = vadd.f32 %v249_v56, %v248_v53 }
 0x16c   :  { %v230_v59 = vmul.f32 %v1016_v40, %v1036_v57  ;;  %v1040_v60 = vpop.f32.mrb[5].mxu0 }
 0x16d   :  { %v231_v61 = vmul.f32 %v1018_v41, %v1040_v60  ;;  %255 = vadd.xlane.f32.xlu0 %v254_v55  ;;  %v1044_v62 = vpop.f32.mrb[6].mxu0 }
 0x16e   :  { %v232_v63 = vmul.f32 %v1016_v40, %v1044_v62  ;;  %v1048_v2 = vpop.f32.mrb[7].mxu0  ;;  %v250_v3 = vmul.f32 %v230_v59, %v230_v59 }
 0x16f   :  { %v233_v6 = vmul.f32 %v1018_v41, %v1048_v2  ;;  %v240_v7 = vadd.f32 %v231_v61, %v230_v59  ;;  %v251_v8 = vmul.f32 %v231_v61, %v231_v61 }
 0x170   :  { %v252_v9 = vmul.f32 %v232_v63, %v232_v63 }
 0x171   :  { %v253_v12 = vmul.f32 %v233_v6, %v233_v6  ;;  %258 = vadd.xlane.f32.xlu0 %v257_v58  ;;  %241 = vadd.xlane.f32.xlu1 %v240_v7  ;;  %v260_v13 = vadd.f32 %v251_v8, %v250_v3  ;;  %v243_v14 = vadd.f32 %v233_v6, %v232_v63 }
 0x173   :  { %v263_v15 = vadd.f32 %v253_v12, %v252_v9 }
 0x175   :  { %261 = vadd.xlane.f32.xlu1 %v260_v13  ;;  %244 = vadd.xlane.f32.xlu0 %v243_v14 }
 0x179   :  { %264 = vadd.xlane.f32.xlu0 %v263_v15 }
 0x186   :  { %339 = vperm.xlu1 %848, %v996_v11  }
 0x18a   :  { %343 = vperm.xlu1 %848, %v1056_v16  }
 0x18e   :  { %849 = vset.pattern.permute.xlu1 %v912_v10 }
 0x18f   :  { %322 = vperm.xlu1 %849, %v1062_v17   ;;  %317 = vperm.xlu0 %847, %v1056_v16  }
 0x193   :  { %327 = vperm.xlu1 %849, %v1070_v18  }
 0x197   :  { %850 = vset.pattern.permute.xlu1 %v914_v34 }
 0x198   :  { %347 = vperm.xlu1 %850, %v1062_v17  }
 0x19c   :  { %351 = vperm.xlu1 %850, %v1070_v18  }
 0x1f6   :  { %v236_v20 = vpop.xlane.xlu0 %235 }
 0x1f7   :  { %v266_v21 = vmul.f32 0.03125, %v236_v20 }
 0x1f8   :  { %v239_v22 = vpop.xlane.xlu1 %238 }
 0x1f9   :  { %v267_v24 = vmul.f32 0.03125, %v239_v22  ;;  %v274_v25 = vmul.f32 %v266_v21, %v266_v21  ;;  %v286_v61 = vsub.f32 %v1020_v42, %v266_v21  ;;  %v287_v63 = vsub.f32 %v1024_v44, %v266_v21 }
 0x1fa   :  { %v256_v23 = vpop.xlane.xlu0 %255 }
 0x1fb   :  { %v270_v26 = vmul.f32 0.03125, %v256_v23  ;;  %v275_v32 = vmul.f32 %v267_v24, %v267_v24  ;;  %v288_v12 = vsub.f32 %v1028_v46, %v267_v24  ;;  %v289_v13 = vsub.f32 %v1032_v48, %v267_v24 }
 0x1fd   :  { %v278_v27 = vsub.f32 %v270_v26, %v274_v25 }
 0x1fe   :  { %v259_v28 = vpop.xlane.xlu0 %258  ;;  %v242_v29 = vpop.xlane.xlu1 %241 }
 0x1ff   :  { %v282_v30 = vmax.f32 %v278_v27, 0.0  ;;  %v271_v31 = vmul.f32 0.03125, %v259_v28  ;;  %v268_v33 = vmul.f32 0.03125, %v242_v29 }
 0x201   :  { %v294_v34 = vadd.f32 1e-05, %v282_v30  ;;  %v279_v35 = vsub.f32 %v271_v31, %v275_v32  ;;  %v276_v36 = vmul.f32 %v268_v33, %v268_v33  ;;  %v290_v44 = vsub.f32 %v1036_v57, %v268_v33 }
 0x202   :  { %v262_v37 = vpop.xlane.xlu1 %261  ;;  %v245_v38 = vpop.xlane.xlu0 %244  ;;  %v291_v21 = vsub.f32 %v1040_v60, %v268_v33 }
 0x203   :  { %895 = vrsqrt.f32 %v294_v34  ;;  %v283_v39 = vmax.f32 %v279_v35, 0.0  ;;  %v272_v43 = vmul.f32 0.03125, %v262_v37  ;;  %v269_v45 = vmul.f32 0.03125, %v245_v38 }
 0x205   :  { %v295_v47 = vadd.f32 1e-05, %v283_v39  ;;  %v280_v49 = vsub.f32 %v272_v43, %v276_v36  ;;  %v277_v53 = vmul.f32 %v269_v45, %v269_v45  ;;  %v292_v35 = vsub.f32 %v1044_v62, %v269_v45 }
 0x206   :  { %v340_v50 = vpop.permute.xlu1 %339  ;;  %v265_v51 = vpop.xlane.xlu0 %264  ;;  %v293_v36 = vsub.f32 %v1048_v2, %v269_v45 }
 0x207   :  { %897 = vrsqrt.f32 %v295_v47  ;;  %v284_v52 = vmax.f32 %v280_v49, 0.0  ;;  %v273_v54 = vmul.f32 0.03125, %v265_v51 }
 0x209   :  { %v296_v55 = vadd.f32 1e-05, %v284_v52  ;;  %v281_v56 = vsub.f32 %v273_v54, %v277_v53 }
 0x20a   :  { %v344_v58 = vpop.permute.xlu1 %343 }
 0x20b   :  { %899 = vrsqrt.f32 %v296_v55  ;;  %v285_v59 = vmax.f32 %v281_v56, 0.0 }
 0x20d   :  { %v896_v3 = vpop.eup %895  ;;  %v297_v6 = vadd.f32 1e-05, %v285_v59 }
 0x20e   :  { %v302_v7 = vmul.f32 %v896_v3, %v286_v61  ;;  %v303_v8 = vmul.f32 %v896_v3, %v287_v63  ;;  %v323_v9 = vpop.permute.xlu1 %322  ;;  %v318_v22 = vpop.permute.xlu0 %317 }
 0x20f   :  { %901 = vrsqrt.f32 %v297_v6 }
 0x210   :  { %v330_v14 = vmul.f32 %v313_v19, %v302_v7  ;;  %v331_v15 = vmul.f32 %v313_v19, %v303_v8 }
 0x211   :  { %v898_v20 = vpop.eup %897 }
 0x212   :  { %v328_v23 = vpop.permute.xlu1 %327  ;;  %v304_v25 = vmul.f32 %v898_v20, %v288_v12  ;;  %v305_v26 = vmul.f32 %v898_v20, %v289_v13  ;;  %v354_v42 = vadd.f32 %v340_v50, %v330_v14  ;;  %v355_v27 = vadd.f32 %v340_v50, %v331_v15 }
 0x214   :  { %v332_v28 = vmul.f32 %v318_v22, %v304_v25  ;;  %v333_v29 = vmul.f32 %v318_v22, %v305_v26  ;;  %v362_v32 = vmax.f32 %v354_v42, 0.0  ;;  %v363_v48 = vmax.f32 %v355_v27, 0.0 }
 0x215   :  { %v900_v30 = vpop.eup %899 }
 0x216   :  { %v306_v31 = vmul.f32 %v900_v30, %v290_v44  ;;  %v307_v46 = vmul.f32 %v900_v30, %v291_v21  ;;  %v356_v24 = vadd.f32 %v344_v58, %v332_v28  ;;  %v357_v19 = vadd.f32 %v344_v58, %v333_v29 }
 0x217   :  { %v348_v34 = vpop.permute.xlu1 %347  ;;  %v370_v50 = vmul.f32 %v1016_v40, %v362_v32  ;;  %v371_v51 = vmul.f32 %v1018_v41, %v363_v48  ;;  %v917_v21 = vmov 2   ;;  %v918_v28 = vmov 3  }
 0x218   :  { %v334_v37 = vmul.f32 %v323_v9, %v306_v31  ;;  %v335_v38 = vmul.f32 %v323_v9, %v307_v46  ;;  %v364_v57 = vmax.f32 %v356_v24, 0.0  ;;  %v365_v43 = vmax.f32 %v357_v19, 0.0  ;;  %852 = vset.pattern.permute.xlu0 %v917_v21  ;;  %851 = vset.pattern.permute.xlu1 %v917_v21 }
 0x219   :  { %v902_v39 = vpop.eup %901  ;;  %v693_v29 = vunpack.c.l.bf16 %v942_v0  ;;  %v694_v30 = vunpack.c.h.bf16 %v942_v0  ;;  %v697_v21 = vunpack.c.h.bf16 %v947_v1 }
 0x21a   :  { %v308_v60 = vmul.f32 %v902_v39, %v292_v35  ;;  %v309_v33 = vmul.f32 %v902_v39, %v293_v36  ;;  %v358_v47 = vadd.f32 %v348_v34, %v334_v37  ;;  %v359_v49 = vadd.f32 %v348_v34, %v335_v38 }
 0x21b   :  { %v372_v52 = vmul.f32 %v1016_v40, %v364_v57  ;;  %v373_v53 = vmul.f32 %v1018_v41, %v365_v43  ;;  %v352_v2 = vpop.permute.xlu1 %351  ;;  %v854_v31 = vpack.i.bf16 %v694_v30, %v693_v29 }
 0x21c   :  { %v336_v62 = vmul.f32 %v328_v23, %v308_v60  ;;  %v337_v54 = vmul.f32 %v328_v23, %v309_v33  ;;  %v366_v56 = vmax.f32 %v358_v47, 0.0  ;;  %v367_v58 = vmax.f32 %v359_v49, 0.0  ;;  %v893_v47 = vld [vmem:[%s1253_s1 + $0x10] sm:$0xff]   ;;  %v894_v49 = vld [vmem:[%s1253_s1 + $0x18] sm:$0xff]  }
 0x21d   :  { %v382_v45 = vpack.c.bf16 %v372_v52, %v370_v50  ;;  %v383_v55 = vpack.c.bf16 %v373_v53, %v371_v51 }
 0x21e   :  { %v360_v59 = vadd.f32 %v352_v2, %v336_v62  ;;  %v361_v61 = vadd.f32 %v352_v2, %v337_v54  ;;  %v374_v6 = vmul.f32 %v1016_v40, %v366_v56  ;;  %v375_v7 = vmul.f32 %v1018_v41, %v367_v58 }
 0x21f   :  { %390 = vrot.lane.b32.xlu1 %v382_v45, %s916_s2 }
 0x220   :  { %v368_v63 = vmax.f32 %v360_v59, 0.0  ;;  %v369_v3 = vmax.f32 %v361_v61, 0.0 }
 0x222   :  { %v376_v8 = vmul.f32 %v1016_v40, %v368_v63  ;;  %v377_v9 = vmul.f32 %v1018_v41, %v369_v3 }
 0x223   :  { %392 = vrot.lane.b32.xlu1 %v383_v55, %s916_s2 }
 0x224   :  { %v384_v12 = vpack.c.bf16 %v376_v8, %v374_v6  ;;  %v385_v13 = vpack.c.bf16 %v377_v9, %v375_v7 }
 0x226   :  { %394 = vrot.lane.b32.xlu0 %v384_v12, %s916_s2 }
 0x227   :  { %396 = vrot.lane.b32.xlu1 %v385_v13, %s916_s2 }
 0x291   :  { %v391_v14 = vpop.permute.xlu1 %390 }
 0x292   :  { %408 = vst.msk [vmem:[#allocation2] sm:$0xff] %vm407_vm5, %v391_v14 }
 0x295   :  { %v393_v15 = vpop.permute.xlu1 %392 }
 0x296   :  { %v399_v20 = vsel %vm398_vm6, %v391_v14, %v393_v15  ;;  %411 = vst.msk [vmem:[#allocation2 + $0x10] sm:$0xff] %vm398_vm6, %v393_v15 }
 0x297   :  { %496 = vmatprep.subr.bf16.mxu1 %v399_v20 }
 0x298   :  { %v395_v22 = vpop.permute.xlu0 %394 }
 0x299   :  { %v397_v23 = vpop.permute.xlu1 %396  ;;  %412 = vst.msk [vmem:[#allocation2 + $0x18] sm:$0xff] %vm407_vm5, %v395_v22  ;;  %v428_v25 = vld [vmem:[#allocation2] sm:$0xff] }
 0x29a   :  { %414 = vst.msk [vmem:[#allocation2 + $0x28] sm:$0xff] %vm398_vm6, %v397_v23  ;;  %v400_v26 = vsel %vm398_vm6, %v395_v22, %v397_v23  ;;  %440 = vrot.lane.b32.xlu0 %v428_v25, %s911_s20  ;;  %497 = vmatpush1.bf16.msra.mxu1 %v428_v25 }
 0x29b   :  { %498 = vmatprep.subr.bf16.mxu1 %v400_v26 }
 0x29d   :  { %v430_v42 = vld [vmem:[#allocation2 + $0x10] sm:$0xff] }
 0x29e   :  { %444 = vrot.lane.b32.xlu1 %v430_v42, %s911_s20  ;;  %442 = vrot.lane.b32.xlu0 %v399_v20, %s911_s20 }
 0x2a0   :  { %v431_v27 = vld [vmem:[#allocation2 + $0x18] sm:$0xff] }
 0x2a1   :  { %499 = vmatpush1.bf16.msra.mxu1 %v431_v27  ;;  %v433_v44 = vld [vmem:[#allocation2 + $0x28] sm:$0xff] }
 0x2a2   :  { %446 = vrot.lane.b32.xlu1 %v431_v27, %s911_s20  ;;  %462 = vrot.lane.b32.xlu0 %v399_v20, %s913_s25 }
 0x2a6   :  { %448 = vrot.lane.b32.xlu1 %v400_v26, %s911_s20  ;;  %450 = vrot.lane.b32.xlu0 %v433_v44, %s911_s20 }
 0x2aa   :  { %464 = vrot.lane.b32.xlu1 %v430_v42, %s913_s25  ;;  %460 = vrot.lane.b32.xlu0 %v428_v25, %s913_s25 }
 0x2ae   :  { %468 = vrot.lane.b32.xlu1 %v400_v26, %s913_s25  ;;  %470 = vrot.lane.b32.xlu0 %v433_v44, %s913_s25 }
 0x2b2   :  { %466 = vrot.lane.b32.xlu1 %v431_v27, %s913_s25  ;;  %640 = vperm.xlu0 %852, %v1056_v16  }
 0x2b6   :  { %635 = vperm.xlu1 %851, %v996_v11   ;;  %884 = vset.pattern.permute.xlu0 %v918_v28 }
 0x2ba   :  { %645 = vperm.xlu1 %851, %v1062_v17  }
 0x2be   :  { %650 = vperm.xlu1 %851, %v1070_v18  }
 0x2c2   :  { %853 = vset.pattern.permute.xlu1 %v918_v28 }
 0x2c3   :  { %662 = vperm.xlu1 %853, %v996_v11  }
 0x2c7   :  { %666 = vperm.xlu1 %853, %v1056_v16  }
 0x2cb   :  { %670 = vperm.xlu1 %853, %v1062_v17  }
 0x2cf   :  { %674 = vperm.xlu1 %853, %v1070_v18  }
 0x2d3   :  { %855 = vrot.lane.b32.xlu1 %v854_v31, %s911_s20  ;;  %v702_v31 = vunpack.c.l.bf16 %v961_v5 }
 0x30c   :  { %v441_v46 = vpop.permute.xlu0 %440 }
 0x310   :  { %v445_v32 = vpop.permute.xlu1 %444  ;;  %v443_v48 = vpop.permute.xlu0 %442 }
 0x311   :  { %v453_v24 = vsel %vm126_vm0, %v443_v48, %v445_v32  ;;  %v452_v11 = vsel %vm126_vm0, %v441_v46, %v443_v48  ;;  %v696_v48 = vunpack.c.l.bf16 %v947_v1 }
 0x312   :  { %500 = vmatprep.subr.bf16.mxu1 %v453_v24 }
 0x313   :  { %501 = vmatpush1.bf16.msra.mxu1 %v452_v11  ;;  %v699_v11 = vunpack.c.l.bf16 %v956_v4 }
 0x314   :  { %v447_v16 = vpop.permute.xlu1 %446  ;;  %v463_v17 = vpop.permute.xlu0 %462 }
 0x318   :  { %v449_v19 = vpop.permute.xlu1 %448  ;;  %v451_v34 = vpop.permute.xlu0 %450 }
 0x319   :  { %v455_v0 = vsel %vm126_vm0, %v449_v19, %v451_v34  ;;  %v454_v18 = vsel %vm126_vm0, %v447_v16, %v449_v19  ;;  %v700_v16 = vunpack.c.h.bf16 %v956_v4  ;;  %v703_v19 = vunpack.c.h.bf16 %v961_v5 }
 0x31a   :  { %502 = vmatprep.subr.bf16.mxu1 %v455_v0 }
 0x31b   :  { %503 = vmatpush1.bf16.msra.mxu1 %v454_v18 }
 0x31c   :  { %v465_v35 = vpop.permute.xlu1 %464  ;;  %v461_v36 = vpop.permute.xlu0 %460 }
 0x31d   :  { %v473_v37 = vsel %vm147_vm1, %v463_v17, %v465_v35  ;;  %v472_v38 = vsel %vm147_vm1, %v461_v36, %v463_v17  ;;  %v869_v17 = vpack.i.bf16 %v700_v16, %v699_v11 }
 0x31e   :  { %504 = vmatprep.subr.bf16.mxu1 %v473_v37 }
 0x31f   :  { %505 = vmatpush1.bf16.msra.mxu1 %v472_v38 }
 0x320   :  { %v469_v39 = vpop.permute.xlu1 %468  ;;  %v471_v57 = vpop.permute.xlu0 %470 }
 0x321   :  { %v475_v43 = vsel %vm147_vm1, %v469_v39, %v471_v57 }
 0x322   :  { %506 = vmatprep.subr.bf16.mxu1 %v475_v43 }
 0x324   :  { %v467_v60 = vpop.permute.xlu1 %466 }
 0x325   :  { %v474_v33 = vsel %vm147_vm1, %v467_v60, %v469_v39 }
 0x326   :  { %507 = vmatpush1.bf16.msra.mxu1 %v474_v33 }
 0x329   :  { %828 = vmatmul.mubr.msk.bf16.vlgmr.msra.gmra.mrb[0].mxu1 %vm166_vm2, %v893_v47 }
 0x32a   :  { %538 = vmatprep.mubr.bf16.mxu1 %v912_v10 }
 0x331   :  { %829 = vmatmul.mubr.msk.bf16.gmra.mrb[4].mxu1 %vm166_vm2, %v894_v49  ;;  %v641_v5 = vpop.permute.xlu0 %640 }
 0x335   :  { %v1180_v18 = vpop.permute.xlu1 %635 }
 0x339   :  { %v1182_v1 = vpop.permute.xlu1 %645 }
 0x33d   :  { %v1184_v35 = vpop.permute.xlu1 %650 }
 0x342   :  { %v1186_v36 = vpop.permute.xlu1 %662 }
 0x346   :  { %v1188_v4 = vpop.permute.xlu1 %666 }
 0x34a   :  { %v1190_v37 = vpop.permute.xlu1 %670 }
 0x34e   :  { %v1192_v38 = vpop.permute.xlu1 %674 }
 0x352   :  { %v1194_v39 = vpop.permute.xlu1 %855 }
 0x3fc   :  { %v1131_v50 = vpop.f32.mrb[0].mxu1 }
 0x3fd   :  { %v549_v51 = vmul.f32 %v1016_v40, %v1131_v50  ;;  %v1135_v52 = vpop.f32.mrb[1].mxu1 }
 0x3fe   :  { %v550_v53 = vmul.f32 %v1018_v41, %v1135_v52  ;;  %v1139_v62 = vpop.f32.mrb[2].mxu1 }
 0x3ff   :  { %v551_v10 = vmul.f32 %v1016_v40, %v1139_v62  ;;  %v1143_v54 = vpop.f32.mrb[3].mxu1  ;;  %v569_v2 = vmul.f32 %v549_v51, %v549_v51 }
 0x400   :  { %v552_v45 = vmul.f32 %v1018_v41, %v1143_v54  ;;  %v557_v55 = vadd.f32 %v550_v53, %v549_v51  ;;  %v570_v56 = vmul.f32 %v550_v53, %v550_v53 }
 0x401   :  { %v571_v58 = vmul.f32 %v551_v10, %v551_v10 }
 0x402   :  { %558 = vadd.xlane.f32.xlu0 %v557_v55  ;;  %v560_v59 = vadd.f32 %v552_v45, %v551_v10  ;;  %v572_v61 = vmul.f32 %v552_v45, %v552_v45  ;;  %v577_v63 = vadd.f32 %v570_v56, %v569_v2 }
 0x404   :  { %561 = vadd.xlane.f32.xlu1 %v560_v59  ;;  %v1147_v3 = vpop.f32.mrb[4].mxu1  ;;  %v580_v6 = vadd.f32 %v572_v61, %v571_v58 }
 0x405   :  { %v553_v7 = vmul.f32 %v1016_v40, %v1147_v3  ;;  %v1151_v8 = vpop.f32.mrb[5].mxu1 }
 0x406   :  { %v554_v9 = vmul.f32 %v1018_v41, %v1151_v8  ;;  %581 = vadd.xlane.f32.xlu0 %v580_v6  ;;  %v1155_v12 = vpop.f32.mrb[6].mxu1 }
 0x407   :  { %v555_v13 = vmul.f32 %v1016_v40, %v1155_v12  ;;  %v1159_v14 = vpop.f32.mrb[7].mxu1  ;;  %v573_v15 = vmul.f32 %v553_v7, %v553_v7  ;;  %v686_v40 = vld [vmem:[%s1252_s0 + $0x8] ss:$12 sps:$4 sm:$0xff]  }
 0x408   :  { %v556_v20 = vmul.f32 %v1018_v41, %v1159_v14  ;;  %578 = vadd.xlane.f32.xlu1 %v577_v63  ;;  %v563_v22 = vadd.f32 %v554_v9, %v553_v7  ;;  %v574_v23 = vmul.f32 %v554_v9, %v554_v9  ;;  %v698_v28 = vunpack.c.h.bf16 %v686_v40  ;;  %v690_v41 = vld [vmem:[%s1252_s0 + $0x20] ss:$12 sps:$4 sm:$0xff]  }
 0x409   :  { %v575_v25 = vmul.f32 %v555_v13, %v555_v13  ;;  %v701_v30 = vunpack.c.l.bf16 %v690_v41  ;;  %v695_v32 = vunpack.c.l.bf16 %v686_v40  ;;  %v704_v34 = vunpack.c.h.bf16 %v690_v41 }
 0x40a   :  { %v576_v26 = vmul.f32 %v556_v20, %v556_v20  ;;  %564 = vadd.xlane.f32.xlu0 %v563_v22  ;;  %v583_v42 = vadd.f32 %v574_v23, %v573_v15  ;;  %v566_v27 = vadd.f32 %v556_v20, %v555_v13  ;;  %v864_v29 = vpack.i.bf16 %v698_v28, %v697_v21 }
 0x40b   :  { %v874_v46 = vpack.i.bf16 %v702_v31, %v701_v30  ;;  %v859_v24 = vpack.i.bf16 %v696_v48, %v695_v32  ;;  %v879_v0 = vpack.i.bf16 %v704_v34, %v703_v19  ;;  %v858_v21 = vunpack.i.h.bf16 %v1194_v39 }
 0x40c   :  { %584 = vadd.xlane.f32.xlu1 %v583_v42  ;;  %v586_v44 = vadd.f32 %v576_v26, %v575_v25  ;;  %v857_v28 = vunpack.i.l.bf16 %v1194_v39 }
 0x40e   :  { %567 = vadd.xlane.f32.xlu0 %v566_v27  ;;  %v742_v39 = vsel %vm126_vm0, %v857_v28, %v858_v21 }
 0x412   :  { %587 = vadd.xlane.f32.xlu0 %v586_v44 }
 0x41d   :  { %865 = vrot.lane.b32.xlu1 %v864_v29, %s911_s20 }
 0x421   :  { %875 = vrot.lane.b32.xlu1 %v874_v46, %s911_s20 }
 0x428   :  { %860 = vrot.lane.b32.xlu0 %v859_v24, %s911_s20 }
 0x42c   :  { %870 = vrot.lane.b32.xlu0 %v869_v17, %s911_s20 }
 0x430   :  { %880 = vrot.lane.b32.xlu0 %v879_v0, %s911_s20 }
 0x48f   :  { %v559_v57 = vpop.xlane.xlu0 %558 }
 0x490   :  { %v589_v60 = vmul.f32 0.03125, %v559_v57 }
 0x491   :  { %v562_v43 = vpop.xlane.xlu1 %561 }
 0x492   :  { %v590_v33 = vmul.f32 0.03125, %v562_v43  ;;  %v597_v45 = vmul.f32 %v589_v60, %v589_v60  ;;  %v609_v16 = vsub.f32 %v1131_v50, %v589_v60  ;;  %v610_v17 = vsub.f32 %v1135_v52, %v589_v60 }
 0x493   :  { %v582_v47 = vpop.xlane.xlu0 %581 }
 0x494   :  { %v598_v49 = vmul.f32 %v590_v33, %v590_v33  ;;  %v594_v51 = vmul.f32 0.03125, %v582_v47  ;;  %v611_v29 = vsub.f32 %v1139_v62, %v590_v33  ;;  %v612_v30 = vsub.f32 %v1143_v54, %v590_v33 }
 0x495   :  { %v579_v53 = vpop.xlane.xlu1 %578 }
 0x496   :  { %v602_v10 = vsub.f32 %v594_v51, %v598_v49  ;;  %v593_v2 = vmul.f32 0.03125, %v579_v53 }
 0x497   :  { %v565_v55 = vpop.xlane.xlu0 %564 }
 0x498   :  { %v606_v56 = vmax.f32 %v602_v10, 0.0  ;;  %v601_v58 = vsub.f32 %v593_v2, %v597_v45  ;;  %v1196_v59 = vmul.f32 0.03125, %v565_v55 }
 0x499   :  { %v585_v61 = vpop.xlane.xlu1 %584 }
 0x49a   :  { %v618_v63 = vadd.f32 1e-05, %v606_v56  ;;  %v605_v6 = vmax.f32 %v601_v58, 0.0  ;;  %v595_v7 = vmul.f32 0.03125, %v585_v61  ;;  %v599_v9 = vmul.f32 %v1196_v59, %v1196_v59 }
 0x49b   :  { %v568_v13 = vpop.xlane.xlu0 %567  ;;  %v613_v62 = vsub.f32 %v1147_v3, %v1196_v59  ;;  %v614_v50 = vsub.f32 %v1151_v8, %v1196_v59 }
 0x49c   :  { %903 = vrsqrt.f32 %v618_v63  ;;  %v617_v15 = vadd.f32 1e-05, %v605_v6  ;;  %v1200_v20 = vmul.f32 0.03125, %v568_v13  ;;  %v603_v22 = vsub.f32 %v595_v7, %v599_v9 }
 0x49d   :  { %v866_v40 = vpop.permute.xlu1 %865 }
 0x49e   :  { %905 = vrsqrt.f32 %v617_v15  ;;  %v607_v23 = vmax.f32 %v603_v22, 0.0  ;;  %v600_v26 = vmul.f32 %v1200_v20, %v1200_v20  ;;  %v868_v24 = vunpack.i.h.bf16 %v866_v40 }
 0x49f   :  { %v588_v25 = vpop.xlane.xlu0 %587  ;;  %v867_v11 = vunpack.i.l.bf16 %v866_v40 }
 0x4a0   :  { %v596_v42 = vmul.f32 0.03125, %v588_v25  ;;  %v619_v27 = vadd.f32 1e-05, %v607_v23 }
 0x4a1   :  { %v876_v47 = vpop.permute.xlu1 %875  ;;  %v745_v60 = vsel %vm126_vm0, %v867_v11, %v868_v24 }
 0x4a2   :  { %v604_v44 = vsub.f32 %v596_v42, %v600_v26  ;;  %907 = vrsqrt.f32 %v619_v27  ;;  %v877_v45 = vunpack.i.l.bf16 %v876_v47  ;;  %v878_v23 = vunpack.i.h.bf16 %v876_v47 }
 0x4a3   :  { %v861_v31 = vpop.permute.xlu0 %860 }
 0x4a4   :  { %v608_v41 = vmax.f32 %v604_v44, 0.0  ;;  %v863_v48 = vunpack.i.h.bf16 %v861_v31  ;;  %v862_v51 = vunpack.i.l.bf16 %v861_v31 }
 0x4a6   :  { %v904_v46 = vpop.eup %903  ;;  %v620_v32 = vadd.f32 1e-05, %v608_v41  ;;  %v744_v52 = vsel %vm126_vm0, %v863_v48, %v867_v11  ;;  %v743_v6 = vsel %vm126_vm0, %v858_v21, %v862_v51 }
 0x4a7   :  { %v627_v19 = vmul.f32 %v904_v46, %v611_v29  ;;  %v628_v34 = vmul.f32 %v904_v46, %v612_v30  ;;  %v871_v49 = vpop.permute.xlu0 %870 }
 0x4a8   :  { %v906_v0 = vpop.eup %905  ;;  %909 = vrsqrt.f32 %v620_v32  ;;  %v873_v55 = vunpack.i.h.bf16 %v871_v49  ;;  %v872_v56 = vunpack.i.l.bf16 %v871_v49 }
 0x4a9   :  { %v625_v54 = vmul.f32 %v906_v0, %v609_v16  ;;  %v626_v57 = vmul.f32 %v906_v0, %v610_v17  ;;  %v655_v43 = vmul.f32 %v641_v5, %v627_v19  ;;  %v656_v33 = vmul.f32 %v641_v5, %v628_v34 }
 0x4aa   :  { %v615_v5 = vsub.f32 %v1155_v12, %v1200_v20 }
 0x4ab   :  { %v653_v53 = vmul.f32 %v1180_v18, %v625_v54  ;;  %v654_v10 = vmul.f32 %v1180_v18, %v626_v57  ;;  %v679_v3 = vadd.f32 %v1188_v4, %v655_v43  ;;  %v680_v2 = vadd.f32 %v1188_v4, %v656_v33  ;;  %v881_v22 = vpop.permute.xlu0 %880 }
 0x4ac   :  { %v908_v8 = vpop.eup %907  ;;  %v616_v18 = vsub.f32 %v1159_v14, %v1200_v20  ;;  %v746_v14 = vsel %vm126_vm0, %v872_v56, %v873_v55  ;;  %v883_v28 = vunpack.i.h.bf16 %v881_v22  ;;  %v882_v41 = vunpack.i.l.bf16 %v881_v22 }
 0x4ad   :  { %v677_v58 = vadd.f32 %v1186_v36, %v653_v53  ;;  %v678_v59 = vadd.f32 %v1186_v36, %v654_v10  ;;  %v760_v61 = vadd.f32 %v744_v52, %v679_v3  ;;  %v761_v63 = vadd.f32 %v745_v60, %v680_v2 }
 0x4ae   :  { %v629_v7 = vmul.f32 %v908_v8, %v613_v62  ;;  %v630_v4 = vmul.f32 %v908_v8, %v614_v50  ;;  %v747_v36 = vsel %vm126_vm0, %v873_v55, %v877_v45  ;;  %v748_v11 = vsel %vm126_vm0, %v878_v23, %v882_v41 }
 0x4af   :  { %v758_v9 = vadd.f32 %v742_v39, %v677_v58  ;;  %v759_v13 = vadd.f32 %v743_v6, %v678_v59  ;;  %v768_v12 = vmax.f32 %v760_v61, 0.0  ;;  %v769_v15 = vmax.f32 %v761_v63, 0.0 }
 0x4b0   :  { %v657_v25 = vmul.f32 %v1182_v1, %v629_v7  ;;  %v658_v26 = vmul.f32 %v1182_v1, %v630_v4  ;;  %v749_v16 = vsel %vm126_vm0, %v882_v41, %v883_v28 }
 0x4b1   :  { %v766_v42 = vmax.f32 %v758_v9, 0.0  ;;  %v767_v27 = vmax.f32 %v759_v13, 0.0  ;;  %v835_v44 = vpack.c.bf16 %v769_v15, %v768_v12 }
 0x4b2   :  { %v910_v20 = vpop.eup %909  ;;  %v681_v40 = vadd.f32 %v1190_v37, %v657_v25  ;;  %v682_v21 = vadd.f32 %v1190_v37, %v658_v26 }
 0x4b3   :  { %v834_v29 = vpack.c.bf16 %v767_v27, %v766_v42  ;;  %799 = vst [vmem:[%s1255_s3 + $0x8] sm:$0xff] %v835_v44  ;;  %v631_v1 = vmul.f32 %v910_v20, %v615_v5  ;;  %v632_v30 = vmul.f32 %v910_v20, %v616_v18 }
 0x4b4   :  { %v763_v31 = vadd.f32 %v747_v36, %v682_v21  ;;  %v762_v46 = vadd.f32 %v746_v14, %v681_v40 }
 0x4b5   :  { %798 = vst [vmem:[%s1255_s3] sm:$0xff] %v834_v29  ;;  %v659_v32 = vmul.f32 %v1184_v35, %v631_v1  ;;  %v660_v48 = vmul.f32 %v1184_v35, %v632_v30 }
 0x4b6   :  { %v771_v37 = vmax.f32 %v763_v31, 0.0  ;;  %v770_v24 = vmax.f32 %v762_v46, 0.0 }
 0x4b7   :  { %v683_v17 = vadd.f32 %v1192_v38, %v659_v32  ;;  %v684_v19 = vadd.f32 %v1192_v38, %v660_v48 }
 0x4b8   :  { %v836_v34 = vpack.c.bf16 %v771_v37, %v770_v24 }
 0x4b9   :  { %v764_v0 = vadd.f32 %v748_v11, %v683_v17  ;;  %v765_v39 = vadd.f32 %v749_v16, %v684_v19 }
 0x4ba   :  { %800 = vst [vmem:[%s1255_s3 + $0x10] sm:$0xff] %v836_v34 }
 0x4bb   :  { %v772_v62 = vmax.f32 %v764_v0, 0.0  ;;  %v773_v54 = vmax.f32 %v765_v39, 0.0 }
 0x4bd   :  { %v837_v35 = vpack.c.bf16 %v773_v54, %v772_v62 }
 0x4bf   :  { %801 = vst [vmem:[%s1255_s3 + $0x18] sm:$0xff] %v837_v35 }

</bundles_post_ra>
